<compile_context>
chip_gen: v7x
topology: tpu7x:2x2x1
jax: 0.10.0
libtpu: 0.0.40
codegen_flags: <defaults>
</compile_context>

<pallas_src>
import functools

import jax
import jax.numpy as jnp
from jax.experimental import pallas as pl
from jax.experimental.pallas import tpu as pltpu


_VMEM_CAP = 48 * 1024 * 1024  # conservative cap; fits v7x's 64 MiB physical VMEM


def _round_up(x, m):
    return ((x + m - 1) // m) * m


def _split_bf16x3(t):
    """3-way bf16 decomposition of an f32 array (c0+c1+c2 ~= t, rel err ~2^-24)."""
    c0 = t.astype(jnp.bfloat16)
    r1 = t - c0.astype(jnp.float32)
    c1 = r1.astype(jnp.bfloat16)
    r2 = r1 - c1.astype(jnp.float32)
    c2 = r2.astype(jnp.bfloat16)
    return jnp.stack([c0, c1, c2], axis=0)          # (3, Vp, Vp) bf16


def _choose_tile_n(N, Vp, table_bytes, tile_n):
    """Pick a row-tile size that fits the VMEM budget and balances v7x cores."""
    # Double-buffered per-row working set: (tile_n, Vp) f32 logits out block
    # plus a (tile_n, 2) int32 fused token in block.
    row_bytes = 2 * (Vp * 4 + 2 * 4)
    budget = _VMEM_CAP - 2 * table_bytes - (8 << 20)     # slack for scratch
    max_rows = max(8, (budget // row_bytes) // 8 * 8) if budget > 0 else 8

    auto = tile_n is None
    if auto:
        tile_n = 2048 if Vp <= 512 else 1024             # amortize ~0.35us/step
    tile_n = int(min(tile_n, max_rows, _round_up(N, 8)))
    tile_n = max(8, _round_up(tile_n, 8))

    if auto:
        nt = -(-N // tile_n)
        if nt > 1 and nt % 2 == 1:                        # even tiles for v7x TCs
            alt = max(8, _round_up(-(-N // (nt + 1)), 8))
            if -(-N // alt) % 2 == 0:
                tile_n = alt
    return tile_n


def _gather_logits(idx, table_ref, tn, vp):
    """Exact embedding gather as 3 single-pass bf16 MXU matmuls (f32 accum)."""
    lane = jax.lax.broadcasted_iota(jnp.int32, (tn, vp), 1)
    onehot = (idx == lane).astype(jnp.bfloat16)           # bf16-exact 0/1
    logits = (jnp.dot(onehot, table_ref[0], preferred_element_type=jnp.float32)
              + jnp.dot(onehot, table_ref[1], preferred_element_type=jnp.float32)
              + jnp.dot(onehot, table_ref[2], preferred_element_type=jnp.float32))
    return logits, lane


def _bigram_train_kernel(tok_ref, table_ref, logits_ref, partial_ref, *, n_valid):
    """Embedding lookup + per-tile cross-entropy partial sum.

    tok_ref:     (tile_n, 2) int32     col 0 = input ids, col 1 = targets
    table_ref:   (3, Vp, Vp) bfloat16  bf16x3 split of the f32 table
    logits_ref:  (tile_n, Vp) float32  logits for this row tile
    partial_ref: (1, 1) float32 (SMEM) sum of NLL over valid rows of the tile
    """
    i = pl.program_id(0)
    tn, vp = logits_ref.shape

    tok = tok_ref[...]
    idx = tok[:, 0:1]                                      # (tn, 1)
    tgt = tok[:, 1:2]                                      # (tn, 1)

    logits, lane = _gather_logits(idx, table_ref, tn, vp)
    logits_ref[...] = logits

    # Cross entropy in f32: logsumexp(logits) - logits[target], summed.
    row_max = jnp.max(logits, axis=-1, keepdims=True)      # (tn, 1)
    lse = jnp.log(jnp.sum(jnp.exp(logits - row_max), axis=-1,
                          keepdims=True)) + row_max        # (tn, 1)
    tgt_logit = jnp.sum(jnp.where(tgt == lane, logits, 0.0),
                        axis=-1, keepdims=True)            # (tn, 1)
    nll = lse - tgt_logit

    if n_valid is not None:  # mask rows beyond the true N (row padding)
        row = i * tn + jax.lax.broadcasted_iota(jnp.int32, (tn, 1), 0)
        nll = jnp.where(row < n_valid, nll, 0.0)

    partial_ref[0, 0] = jnp.sum(nll)


def _bigram_infer_kernel(idx_ref, table_ref, logits_ref):
    """Embedding lookup only (targets=None) — no target DMA, no loss work."""
    tn, vp = logits_ref.shape
    idx = idx_ref[...]                                      # (tn, 1)
    logits, _ = _gather_logits(idx, table_ref, tn, vp)
    logits_ref[...] = logits.astype(logits_ref.dtype)


def bigram_forward(index, table, targets=None, *, tile_n=None,
                   return_padded=False, logits_dtype=jnp.float32):
    """JAX wrapper reproducing BigramLanguageModel.forward.

    index:   (B, T) int token ids
    table:   (V, V) float32 embedding table
    targets: optional (B, T) int token ids
    Returns (logits, loss):
      targets is None: logits (B, T, V)   [(B, T, Vp) if return_padded], None
      else:            logits (B*T, V)    [(B*T, Vp) if return_padded], scalar
    Padded columns (V..Vp) carry ~-1e9, so they vanish under softmax; do not
    run raw sums/argmin over the vocab axis of padded logits.
    """
    B, T = index.shape
    V = table.shape[0]
    N = B * T

    # Lane-dense vocab: pad V up to a multiple of 128; padded columns get a
    # large negative bias so they drop out of softmax / cross entropy.
    Vp = _round_up(V, 128)
    table_p = table.astype(jnp.float32)
    if Vp != V:
        table_p = jnp.pad(table_p, ((0, Vp - V), (0, Vp - V)))
        table_p = table_p.at[:, V:].set(-1e9)
    table3 = _split_bf16x3(table_p)                        # (3, Vp, Vp) bf16
    table_bytes = 3 * Vp * Vp * 2

    tile_n = _choose_tile_n(N, Vp, table_bytes, tile_n)
    n_pad = _round_up(N, tile_n)
    num_tiles = n_pad // tile_n

    tile_bytes = 2 * tile_n * (Vp * 4 + 2 * 4)
    vmem_limit = int(max(16 << 20,
                         min(2 * table_bytes + tile_bytes + (8 << 20), _VMEM_CAP)))
    cparams = pltpu.CompilerParams(dimension_semantics=("parallel",),
                                   vmem_limit_bytes=vmem_limit)

    idx_flat = jnp.pad(index.reshape(N).astype(jnp.int32), (0, n_pad - N))
    # The table block is grid-invariant (constant index_map) -> VMEM resident.
    table_spec = pl.BlockSpec((3, Vp, Vp), lambda i: (0, 0, 0))

    if targets is None:
        logits_p = pl.pallas_call(
            _bigram_infer_kernel,
            out_shape=jax.ShapeDtypeStruct((n_pad, Vp), logits_dtype),
            grid=(num_tiles,),
            in_specs=[
                pl.BlockSpec((tile_n, 1), lambda i: (i, 0)),
                table_spec,
            ],
            out_specs=pl.BlockSpec((tile_n, Vp), lambda i: (i, 0)),
            compiler_params=cparams,
        )(idx_flat.reshape(n_pad, 1), table3)
        logits_p = logits_p if n_pad == N else logits_p[:N]   # contiguous rows only
        if return_padded:
            return logits_p.reshape(B, T, Vp), None
        return logits_p[:, :V].reshape(B, T, V), None

    tgt_flat = jnp.pad(targets.reshape(N).astype(jnp.int32), (0, n_pad - N))
    tokens = jnp.stack([idx_flat, tgt_flat], axis=1)           # (n_pad, 2)

    kernel = functools.partial(_bigram_train_kernel,
                               n_valid=(N if n_pad != N else None))

    logits_p, partials = pl.pallas_call(
        kernel,
        out_shape=(
            jax.ShapeDtypeStruct((n_pad, Vp), jnp.float32),
            jax.ShapeDtypeStruct((num_tiles, 1), jnp.float32),
        ),
        grid=(num_tiles,),
        in_specs=[
            pl.BlockSpec((tile_n, 2), lambda i: (i, 0)),
            table_spec,
        ],
        out_specs=(
            pl.BlockSpec((tile_n, Vp), lambda i: (i, 0)),
            pl.BlockSpec((1, 1), lambda i: (i, 0), memory_space=pltpu.SMEM),
        ),
        compiler_params=cparams,
    )(tokens, table3)

    loss = jnp.sum(partials) / N
    logits_p = logits_p if n_pad == N else logits_p[:N]        # contiguous rows only
    if return_padded:
        return logits_p, loss
    return logits_p[:, :V], loss                               # PyTorch (B*T, V)


def _reference(index, table, targets):
    """Pure-JAX reference matching the PyTorch semantics."""
    logits = table[index]                                      # (B, T, V)
    B, T, V = logits.shape
    lf = logits.reshape(B * T, V)
    tf = targets.reshape(B * T)
    lse = jax.nn.logsumexp(lf, axis=-1)
    nll = lse - lf[jnp.arange(B * T), tf]
    return logits, jnp.mean(nll)


if __name__ == "__main__":
    def run_case(B, T, V, tile_n, key, check_padded=False):
        k_tab, k_idx, k_tgt = jax.random.split(key, 3)
        table = jax.random.normal(k_tab, (V, V), dtype=jnp.float32)
        index = jax.random.randint(k_idx, (B, T), 0, V, dtype=jnp.int32)
        targets = jax.random.randint(k_tgt, (B, T), 0, V, dtype=jnp.int32)

        ref_logits, ref_loss = _reference(index, table, targets)

        # Training path (PyTorch returns flattened (B*T, V) logits + scalar loss).
        logits, loss = bigram_forward(index, table, targets, tile_n=tile_n)
        jax.block_until_ready((logits, loss))
        assert logits.shape == (B * T, V)
        assert jnp.allclose(logits, ref_logits.reshape(B * T, V),
                            atol=1e-5, rtol=1e-5)
        assert jnp.allclose(loss, ref_loss, atol=1e-5, rtol=1e-5)

        # Inference path: no loss, (B, T, V) logits.
        logits_inf, loss_none = bigram_forward(index, table, None, tile_n=tile_n)
        jax.block_until_ready(logits_inf)
        assert loss_none is None
        assert logits_inf.shape == (B, T, V)
        assert jnp.allclose(logits_inf, ref_logits, atol=1e-5, rtol=1e-5)

        if check_padded:
            # Padded-vocab return (skips the [:,:V] unpad on the hot path).
            logits_pad, _ = bigram_forward(index, table, None, tile_n=tile_n,
                                           return_padded=True)
            jax.block_until_ready(logits_pad)
            Vp = logits_pad.shape[-1]
            assert Vp % 128 == 0
            assert jnp.allclose(logits_pad[..., :V], ref_logits,
                                atol=1e-5, rtol=1e-5)

    # Char-level vocab (V=65): exercises lane padding + padded-return path.
    run_case(2, 8, 65, None, jax.random.PRNGKey(0), check_padded=True)
    # Multi-tile grid with row padding (N=30 -> two 16-row tiles + mask).
    run_case(3, 10, 128, 16, jax.random.PRNGKey(1))

    print("KERNEL_OK")
</pallas_src>

<mosaic_0001>
module attributes {stable_mosaic.version = 11 : i64} {
  func.func @_bigram_train_kernel(%arg0: i32, %arg1: memref<16x2xi32, #tpu.memory_space<vmem>>, %arg2: memref<3x128x128xbf16, #tpu.memory_space<vmem>>, %arg3: memref<16x128xf32, #tpu.memory_space<vmem>>, %arg4: memref<1x1xf32, #tpu.memory_space<smem>>) attributes {dimension_semantics = [#tpu.dimension_semantics<parallel>], iteration_bounds = array<i64: 1>, scalar_prefetch = 0 : i64, scratch_operands = 0 : i64, tpu.core_type = #tpu.core_type<tc>, window_params = [{transform_indices = @transform_0, window_bounds = array<i64: 16, 2>}, {pipeline_mode = #tpu.pipeline_mode<synchronous>, transform_indices = @transform_1, window_bounds = array<i64: 3, 128, 128>}, {transform_indices = @transform_2, window_bounds = array<i64: 16, 128>}, {transform_indices = @transform_3, window_bounds = array<i64: 1, 1>}]} {
    %c0 = arith.constant 0 : index
    %c0_0 = arith.constant 0 : index
    %0 = vector.load %arg1[%c0, %c0_0] : memref<16x2xi32, #tpu.memory_space<vmem>>, vector<16x2xi32>
    %1 = vector.extract_strided_slice %0 {offsets = [0, 0], sizes = [16, 1], strides = [1, 1]} : vector<16x2xi32> to vector<16x1xi32>
    %2 = vector.extract_strided_slice %0 {offsets = [0, 1], sizes = [16, 1], strides = [1, 1]} : vector<16x2xi32> to vector<16x1xi32>
    %3 = tpu.iota {dimensions = array<i32: 1>} : vector<16x128xi32>
    %4 = vector.broadcast %1 : vector<16x1xi32> to vector<16x128xi32>
    %5 = arith.cmpi eq, %4, %3 : vector<16x128xi32>
    %6 = arith.extui %5 : vector<16x128xi1> to vector<16x128xi32>
    %7 = arith.sitofp %6 : vector<16x128xi32> to vector<16x128xf32>
    %8 = arith.truncf %7 : vector<16x128xf32> to vector<16x128xbf16>
    %c0_1 = arith.constant 0 : index
    %c0_2 = arith.constant 0 : index
    %c0_3 = arith.constant 0 : index
    %9 = vector.load %arg2[%c0_1, %c0_2, %c0_3] : memref<3x128x128xbf16, #tpu.memory_space<vmem>>, vector<1x128x128xbf16>
    %10 = vector.shape_cast %9 : vector<1x128x128xbf16> to vector<128x128xbf16>
    %cst = arith.constant dense<0.000000e+00> : vector<16x128xf32>
    %11 = tpu.matmul %8, %10, %cst {dimension_numbers = #tpu.dot_dimension_numbers<[1], [0], [0], [1], [0, 0, 1, 1], [], []>} : vector<16x128xbf16>, vector<128x128xbf16>, vector<16x128xf32> -> vector<16x128xf32>
    %c1 = arith.constant 1 : index
    %c0_4 = arith.constant 0 : index
    %c0_5 = arith.constant 0 : index
    %12 = vector.load %arg2[%c1, %c0_4, %c0_5] : memref<3x128x128xbf16, #tpu.memory_space<vmem>>, vector<1x128x128xbf16>
    %13 = vector.shape_cast %12 : vector<1x128x128xbf16> to vector<128x128xbf16>
    %cst_6 = arith.constant dense<0.000000e+00> : vector<16x128xf32>
    %14 = tpu.matmul %8, %13, %cst_6 {dimension_numbers = #tpu.dot_dimension_numbers<[1], [0], [0], [1], [0, 0, 1, 1], [], []>} : vector<16x128xbf16>, vector<128x128xbf16>, vector<16x128xf32> -> vector<16x128xf32>
    %15 = arith.addf %11, %14 : vector<16x128xf32>
    %c2 = arith.constant 2 : index
    %c0_7 = arith.constant 0 : index
    %c0_8 = arith.constant 0 : index
    %16 = vector.load %arg2[%c2, %c0_7, %c0_8] : memref<3x128x128xbf16, #tpu.memory_space<vmem>>, vector<1x128x128xbf16>
    %17 = vector.shape_cast %16 : vector<1x128x128xbf16> to vector<128x128xbf16>
    %cst_9 = arith.constant dense<0.000000e+00> : vector<16x128xf32>
    %18 = tpu.matmul %8, %17, %cst_9 {dimension_numbers = #tpu.dot_dimension_numbers<[1], [0], [0], [1], [0, 0, 1, 1], [], []>} : vector<16x128xbf16>, vector<128x128xbf16>, vector<16x128xf32> -> vector<16x128xf32>
    %19 = arith.addf %15, %18 : vector<16x128xf32>
    %c0_10 = arith.constant 0 : index
    %c0_11 = arith.constant 0 : index
    %20 = vector.load %arg3[%c0_10, %c0_11] : memref<16x128xf32, #tpu.memory_space<vmem>>, vector<16x128xf32>
    tpu.vector_store %arg3[%c0_10, %c0_11], %19 {strides = array<i32>} : memref<16x128xf32, #tpu.memory_space<vmem>>, vector<16x128xf32>,
    %cst_12 = arith.constant dense<0xFF800000> : vector<16xf32>
    %21 = vector.multi_reduction <maximumf>, %19, %cst_12 [1] : vector<16x128xf32> to vector<16xf32>
    %22 = vector.shape_cast %21 : vector<16xf32> to vector<16x1xf32>
    %23 = vector.broadcast %22 : vector<16x1xf32> to vector<16x128xf32>
    %24 = arith.subf %19, %23 : vector<16x128xf32>
    %25 = math.exp %24 : vector<16x128xf32>
    %cst_13 = arith.constant dense<0.000000e+00> : vector<16xf32>
    %26 = vector.multi_reduction <add>, %25, %cst_13 [1] : vector<16x128xf32> to vector<16xf32>
    %27 = vector.shape_cast %26 : vector<16xf32> to vector<16x1xf32>
    %28 = math.log %27 : vector<16x1xf32>
    %29 = arith.addf %28, %22 : vector<16x1xf32>
    %30 = vector.broadcast %2 : vector<16x1xi32> to vector<16x128xi32>
    %31 = arith.cmpi eq, %30, %3 : vector<16x128xi32>
    %cst_14 = arith.constant 0.000000e+00 : f32
    %32 = vector.broadcast %cst_14 : f32 to vector<16x128xf32>
    %33 = arith.select %31, %19, %32 : vector<16x128xi1>, vector<16x128xf32>
    %cst_15 = arith.constant dense<0.000000e+00> : vector<16xf32>
    %34 = vector.multi_reduction <add>, %33, %cst_15 [1] : vector<16x128xf32> to vector<16xf32>
    %35 = vector.shape_cast %34 : vector<16xf32> to vector<16x1xf32>
    %36 = arith.subf %29, %35 : vector<16x1xf32>
    %37 = vector.shape_cast %36 : vector<16x1xf32> to vector<1x16x1xf32>
    %cst_16 = arith.constant dense<0.000000e+00> : vector<1xf32>
    %38 = vector.multi_reduction <add>, %37, %cst_16 [1, 2] : vector<1x16x1xf32> to vector<1xf32>
    %39 = vector.shape_cast %38 : vector<1xf32> to vector<1x1x1xf32>
    %40 = vector.extract %39[0, 0, 0] : f32 from vector<1x1x1xf32>
    %c0_17 = arith.constant 0 : index
    %c0_18 = arith.constant 0 : index
    %41 = memref.load %arg4[%c0_17, %c0_18] : memref<1x1xf32, #tpu.memory_space<smem>>
    memref.store %40, %arg4[%c0_17, %c0_18] : memref<1x1xf32, #tpu.memory_space<smem>>
    return
  }
  func.func @transform_0(%arg0: i32) -> (i32, i32) {
    %c0_i32 = arith.constant 0 : i32
    %c0_i32_0 = arith.constant 0 : i32
    return %arg0, %c0_i32 : i32, i32
  }
  func.func @transform_1(%arg0: i32) -> (i32, i32, i32) {
    %c0_i32 = arith.constant 0 : i32
    %c0_i32_0 = arith.constant 0 : i32
    %c0_i32_1 = arith.constant 0 : i32
    %c0_i32_2 = arith.constant 0 : i32
    return %c0_i32, %c0_i32_0, %c0_i32_1 : i32, i32, i32
  }
  func.func @transform_2(%arg0: i32) -> (i32, i32) {
    %c0_i32 = arith.constant 0 : i32
    %c0_i32_0 = arith.constant 0 : i32
    return %arg0, %c0_i32 : i32, i32
  }
  func.func @transform_3(%arg0: i32) -> (i32, i32) {
    %c0_i32 = arith.constant 0 : i32
    %c0_i32_0 = arith.constant 0 : i32
    return %arg0, %c0_i32 : i32, i32
  }
}

</mosaic_0001>

<bundles_post_ra>
// kernel: tpu_custom_call.1
= control target key start
LH: loop header
LB: loop body
LE: loop exit
PB: predicated region body
PF: predicated region fallthrough
CT: control target
= control target key end

     0   :  { %9 = vsyncpa [#allocation3], 0  ;;  %s807_s0 = inlined_call_operand.vmem [shape: s32[16,2], index: 0, kind: input, shape index: {}]   ;;  %s808_s1 = inlined_call_operand.hbm [shape: bf16[3,128,128], index: 1, kind: input, shape index: {}]   ;;  %s809_s2 = inlined_call_operand.hbm [shape: f32[16,128], index: 2, kind: output, shape index: {0}]   ;;  %s810_s3 = inlined_call_operand.hbm [shape: f32[1,1], index: 3, kind: output, shape index: {1}]  }
   0x1   :  { %10 = vsyncpa [#allocation4], 0 }
   0x2   :  { %11 = vsyncpa [#allocation5], 0  ;;  %s683_s12 = smov [#allocation2]   ;;  %s623_s16 = scalar_lea.hbm %s808_s1, 3072 }
   0x3   :  { %s19_s13 = sshll.u32 %s683_s12, 4  ;;  %p624_p0 = scmp.ne.s32.totalorder %s808_s1, %s623_s16  ;;  %s20_s13 = int_to_ptr.vmem [resolvable:$true] %s19_s13 }
   0x4   :  { %p627_p1 = scmp.lt.u32.totalorder %s623_s16, %s808_s1 }
   0x6   :  { %p629_p2 = pnand %p627_p1, %p624_p0 }
   0x8   :  { %632 = shalt.err (!%p629_p2)
}
   0x9   :  { %s633_s21 = scalar_lea.vmem %s20_s13, 3072  ;;  %p638_p4 = scmp.lt.s32.totalorder %s20_s13, %s20_s13 }
   0xa   :  { %p634_p3 = scmp.ne.s32.totalorder %s20_s13, %s633_s21  ;;  %p639_p5 = scmp.lt.s32.totalorder %s633_s21, %s633_s21 }
   0xc   :  { %p640_p6 = por %p639_p5, %p638_p4 }
   0xe   :  { %p641_p7 = pnand %p640_p6, %p634_p3 }
  0x10   :  { %644 = shalt.err (!%p641_p7)
}
  0x11   :  { %s684_s22 = smov 64   ;;  %s685_s23 = smov 4  }
  0x12   :  { %25 = dma.hbm_to_vmem [thread:$0]  %s808_s1, 3072, %s20_s13, [#allocation3], %s684_s22, %s684_s22, %s685_s23  }
  0x13   :  { %677 = dma.done.wait [#allocation3], 3072  }
  0x14   :  { %678 = vsyncadd [#allocation3], 4294964224  ;;  %v686_v0 = vmov 0   ;;  %v687_v1 = vmov 0.0   ;;  %v30_v2 = vld [vmem:[%s807_s0] sm:$0xff]  ;;  %v735_v3 = vld [vmem:[%s807_s0 + $0x8] sm:$0xff]  ;;  %v32_v21 = vlaneseq }
  0x15   :  { %588 = vset.pattern.permute.xlu0 %v686_v0  ;;  %528 = vmatprep.subr.bf16.mxu0 %v687_v1  ;;  %v591_v4 = vld [vmem:[#allocation2] sm:$0xff]   ;;  %v593_v6 = vld [vmem:[#allocation2 + $0x8] sm:$0xff]   ;;  %vm688_vm0 = vmmov 0   ;;  %v595_v8 = vld [vmem:[#allocation2 + $0x10] sm:$0xff]   ;;  %v689_v20 = vmov 1   ;;  %vm404_vm6 = vcmask 7168  }
  0x16   :  { %508 = vmatprep.subr.bf16.mxu1 %v687_v1  ;;  %35 = vperm.xlu0 %588, %v30_v2   ;;  %v592_v5 = vld [vmem:[#allocation2 + $0x40] sm:$0xff]   ;;  %v594_v7 = vld [vmem:[#allocation2 + $0x48] sm:$0xff]   ;;  %v596_v9 = vld [vmem:[#allocation2 + $0x50] sm:$0xff]   ;;  %v757_v23 = vand.u32 127, %v32_v21  ;;  %v690_v27 = vmov 1.0|1.0  }
  0x17   :  { %529 = vmatpush3.bf16.msra.mxu0 %v591_v4  ;;  %509 = vmatpush3.bf16.msra.mxu1 %v592_v5  ;;  %v597_v10 = vld [vmem:[#allocation2 + $0x18] sm:$0xff]   ;;  %v599_v12 = vld [vmem:[#allocation2 + $0x20] sm:$0xff]   ;;  %v601_v14 = vld [vmem:[#allocation2 + $0x28] sm:$0xff]   ;;  %s691_s0 = smov [#allocation6]  }
  0x18   :  { %530 = vmatprep.subr.bf16.mxu0 %v687_v1  ;;  %510 = vmatprep.subr.bf16.mxu1 %v687_v1  ;;  %v598_v11 = vld [vmem:[#allocation2 + $0x58] sm:$0xff]   ;;  %v600_v13 = vld [vmem:[#allocation2 + $0x60] sm:$0xff]   ;;  %v602_v15 = vld [vmem:[#allocation2 + $0x68] sm:$0xff]   ;;  %s424_s1 = sshll.u32 %s691_s0, 4  ;;  %s425_s1 = int_to_ptr.vmem [resolvable:$true] %s424_s1 }
  0x19   :  { %524 = vmatprep.mubr.msk.bf16.mxu1 %vm688_vm0, %v687_v1  ;;  %544 = vmatprep.mubr.msk.bf16.mxu0 %vm688_vm0, %v687_v1  ;;  %v603_v16 = vld [vmem:[#allocation2 + $0x30] sm:$0xff]   ;;  %v605_v18 = vld [vmem:[#allocation2 + $0x38] sm:$0xff]   ;;  %v607_v25 = vld [vmem:[#allocation2 + $0x80] sm:$0xff]   ;;  %s645_s30 = scalar_lea.vmem %s425_s1, 256  ;;  %p650_p9 = scmp.lt.s32.totalorder %s425_s1, %s425_s1 }
  0x1a   :  { %38 = vperm.xlu0 %588, %v735_v3   ;;  %v604_v17 = vld [vmem:[#allocation2 + $0x70] sm:$0xff]   ;;  %v606_v19 = vld [vmem:[#allocation2 + $0x78] sm:$0xff]   ;;  %590 = vset.pattern.permute.xlu1 %v689_v20  ;;  %v608_v28 = vld [vmem:[#allocation2 + $0x88] sm:$0xff]   ;;  %p646_p8 = scmp.ne.s32.totalorder %s425_s1, %s645_s30  ;;  %p651_p10 = scmp.lt.s32.totalorder %s645_s30, %s645_s30 }
  0x1b   :  { %531 = vmatpush3.bf16.msra.mxu0 %v593_v6  ;;  %511 = vmatpush3.bf16.msra.mxu1 %v594_v7  ;;  %v609_v29 = vld [vmem:[#allocation2 + $0x90] sm:$0xff]   ;;  %v610_v30 = vld [vmem:[#allocation2 + $0x98] sm:$0xff]   ;;  %v611_v31 = vld [vmem:[#allocation2 + $0xa0] sm:$0xff]  }
  0x1c   :  { %532 = vmatprep.subr.bf16.mxu0 %v687_v1  ;;  %512 = vmatprep.subr.bf16.mxu1 %v687_v1  ;;  %v612_v32 = vld [vmem:[#allocation2 + $0xa8] sm:$0xff]   ;;  %v613_v33 = vld [vmem:[#allocation2 + $0xb0] sm:$0xff]   ;;  %v614_v34 = vld [vmem:[#allocation2 + $0xb8] sm:$0xff]   ;;  %p652_p11 = por %p651_p10, %p650_p9 }
  0x1e   :  { %589 = vset.pattern.permute.xlu0 %v689_v20  ;;  %p653_p12 = pnand %p652_p11, %p646_p8 }
  0x1f   :  { %533 = vmatpush3.bf16.msra.mxu0 %v595_v8  ;;  %513 = vmatpush3.bf16.msra.mxu1 %v596_v9 }
  0x20   :  { %534 = vmatprep.subr.bf16.mxu0 %v687_v1  ;;  %514 = vmatprep.subr.bf16.mxu1 %v687_v1 }
  0x21   :  { %389 = vperm.xlu0 %589, %v30_v2  }
  0x23   :  { %535 = vmatpush3.bf16.msra.mxu0 %v597_v10  ;;  %515 = vmatpush3.bf16.msra.mxu1 %v598_v11 }
  0x24   :  { %536 = vmatprep.subr.bf16.mxu0 %v687_v1  ;;  %516 = vmatprep.subr.bf16.mxu1 %v687_v1 }
  0x27   :  { %537 = vmatpush3.bf16.msra.mxu0 %v599_v12  ;;  %517 = vmatpush3.bf16.msra.mxu1 %v600_v13 }
  0x28   :  { %538 = vmatprep.subr.bf16.mxu0 %v687_v1  ;;  %518 = vmatprep.subr.bf16.mxu1 %v687_v1 }
  0x2b   :  { %539 = vmatpush3.bf16.msra.mxu0 %v601_v14  ;;  %519 = vmatpush3.bf16.msra.mxu1 %v602_v15 }
  0x2c   :  { %540 = vmatprep.subr.bf16.mxu0 %v687_v1  ;;  %520 = vmatprep.subr.bf16.mxu1 %v687_v1 }
  0x2f   :  { %541 = vmatpush3.bf16.msra.mxu0 %v603_v16  ;;  %521 = vmatpush3.bf16.msra.mxu1 %v604_v17 }
  0x30   :  { %542 = vmatprep.subr.bf16.mxu0 %v687_v1  ;;  %522 = vmatprep.subr.bf16.mxu1 %v687_v1 }
  0x33   :  { %543 = vmatpush3.bf16.msra.mxu0 %v605_v18  ;;  %523 = vmatpush3.bf16.msra.mxu1 %v606_v19 }
  0x34   :  { %548 = vmatprep.subr.bf16.mxu0 %v687_v1 }
  0x95   :  { %v36_v22 = vpop.permute.xlu0 %35 }
  0x96   :  { %vm40_vm1 = vcmp.eq.s32.totalorder %v36_v22, %v757_v23 }
  0x99   :  { %v39_v24 = vpop.permute.xlu0 %38 }
  0x9a   :  { %vm41_vm2 = vcmp.eq.s32.totalorder %v39_v24, %v757_v23 }
  0x9b   :  { %vm761_vm3 = vmpackc.low %vm41_vm2, %vm40_vm1 }
  0x9c   :  { %525 = vmatmul.mubr.msk.bf16.vlgmr.msra.gmra.mrb[0].mxu1 %vm761_vm3, %v690_v27  ;;  %545 = vmatmul.mubr.msk.bf16.vlgmr.msra.gmra.mrb[0].mxu0 %vm761_vm3, %v690_v27 }
  0x9d   :  { %549 = vmatpush3.bf16.msra.mxu0 %v607_v25  ;;  %564 = vmatprep.mubr.msk.bf16.mxu0 %vm688_vm0, %v687_v1 }
  0x9e   :  { %550 = vmatprep.subr.bf16.mxu0 %v687_v1 }
  0xa0   :  { %v390_v51 = vpop.permute.xlu0 %389 }
  0xa1   :  { %551 = vmatpush3.bf16.msra.mxu0 %v608_v28  ;;  %vm394_vm4 = vcmp.eq.s32.totalorder %v390_v51, %v757_v23 }
  0xa2   :  { %552 = vmatprep.subr.bf16.mxu0 %v687_v1 }
  0xa5   :  { %553 = vmatpush3.bf16.msra.mxu0 %v609_v29 }
  0xa6   :  { %554 = vmatprep.subr.bf16.mxu0 %v687_v1 }
  0xa9   :  { %555 = vmatpush3.bf16.msra.mxu0 %v610_v30 }
  0xaa   :  { %556 = vmatprep.subr.bf16.mxu0 %v687_v1 }
  0xad   :  { %557 = vmatpush3.bf16.msra.mxu0 %v611_v31 }
  0xae   :  { %558 = vmatprep.subr.bf16.mxu0 %v687_v1 }
  0xb1   :  { %559 = vmatpush3.bf16.msra.mxu0 %v612_v32 }
  0xb2   :  { %560 = vmatprep.subr.bf16.mxu0 %v687_v1 }
  0xb5   :  { %561 = vmatpush3.bf16.msra.mxu0 %v613_v33 }
  0xb6   :  { %562 = vmatprep.subr.bf16.mxu0 %v687_v1 }
  0xb9   :  { %563 = vmatpush3.bf16.msra.mxu0 %v614_v34 }
  0xbc   :  { %565 = vmatmul.mubr.msk.bf16.vlgmr.msra.gmra.mrb[0].mxu0 %vm761_vm3, %v690_v27 }
 0x16f   :  { %v162_v35 = vpop.f32.mrb[0].mxu1 }
 0x170   :  { %v526_v36 = vpop.f32.mrb[1].mxu1 }
 0x171   :  { %v165_v37 = vpop.f32.mrb[2].mxu1 }
 0x172   :  { %v527_v38 = vpop.f32.mrb[3].mxu1 }
 0x18f   :  { %v357_v39 = vpop.f32.mrb[0].mxu0 }
 0x190   :  { %v568_v40 = vadd.f32 %v357_v39, %v162_v35  ;;  %v566_v41 = vpop.f32.mrb[1].mxu0 }
 0x191   :  { %v360_v42 = vpop.f32.mrb[2].mxu0 }
 0x192   :  { %366 = vst [vmem:[#allocation6] sm:$0xff] %v568_v40  ;;  %v569_v43 = vadd.f32 %v360_v42, %v165_v37  ;;  %v567_v44 = vpop.f32.mrb[3].mxu0  ;;  %368 = vmax.xlane.f32.xlu1 %v568_v40  ;;  %v396_v55 = vsel %vm394_vm4, %v568_v40, 0.0 }
 0x194   :  { %367 = vst [vmem:[#allocation6 + $0x8] sm:$0xff] %v569_v43 }
 0x196   :  { %370 = vmax.xlane.f32.xlu1 %v569_v43 }
 0x1a7   :  { %392 = vperm.xlu1 %590, %v735_v3  }
 0x21f   :  { %v369_v45 = vpop.xlane.xlu1 %368 }
 0x220   :  { %v372_v46 = vsub.f32 %v568_v40, %v369_v45 }
 0x222   :  { %v374_v47 = vmul.f32 1.442695, %v372_v46 }
 0x223   :  { %v371_v48 = vpop.xlane.xlu1 %370 }
 0x224   :  { %615 = vpow2.f32 %v374_v47  ;;  %v373_v49 = vsub.f32 %v569_v43, %v371_v48 }
 0x226   :  { %v376_v50 = vmul.f32 1.442695, %v373_v49 }
 0x227   :  { %v393_v53 = vpop.permute.xlu1 %392 }
 0x228   :  { %617 = vpow2.f32 %v376_v50  ;;  %vm395_vm5 = vcmp.eq.s32.totalorder %v393_v53, %v757_v23 }
 0x229   :  { %v397_v56 = vsel %vm395_vm5, %v569_v43, 0.0 }
 0x22e   :  { %v616_v52 = vpop.eup %615 }
 0x22f   :  { %378 = vadd.xlane.f32.xlu0 %v616_v52 }
 0x232   :  { %v618_v54 = vpop.eup %617 }
 0x233   :  { %380 = vadd.xlane.f32.xlu1 %v618_v54  ;;  %398 = vadd.xlane.f32.xlu0 %v396_v55 }
 0x237   :  { %400 = vadd.xlane.f32.xlu0 %v397_v56 }
 0x2bc   :  { %v379_v57 = vpop.xlane.xlu0 %378 }
 0x2bd   :  { %619 = vlog2.f32 %v379_v57 }
 0x2c0   :  { %v381_v58 = vpop.xlane.xlu1 %380  ;;  %v399_v61 = vpop.xlane.xlu0 %398 }
 0x2c1   :  { %621 = vlog2.f32 %v381_v58 }
 0x2c4   :  { %v401_v3 = vpop.xlane.xlu0 %400 }
 0x2c7   :  { %v620_v59 = vpop.eup %619 }
 0x2c8   :  { %v383_v60 = vmul.f32 0.6931472, %v620_v59 }
 0x2ca   :  { %v386_v62 = vadd.f32 %v383_v60, %v369_v45 }
 0x2cb   :  { %v622_v63 = vpop.eup %621 }
 0x2cc   :  { %v385_v0 = vmul.f32 0.6931472, %v622_v63  ;;  %v402_v1 = vsub.f32 %v386_v62, %v399_v61 }
 0x2ce   :  { %v387_v2 = vadd.f32 %v385_v0, %v371_v48  ;;  %v405_v5 = vsel %vm404_vm6, %v402_v1, 0.0 }
 0x2d0   :  { %v403_v4 = vsub.f32 %v387_v2, %v401_v3 }
 0x2d2   :  { %v406_v6 = vsel %vm404_vm6, %v403_v4, 0.0 }
 0x2d3   :  { %v407_v7 = vadd.f32 %v406_v6, %v405_v5 }
 0x2d5   :  { %408 = vadd.xlane.f32.xlu0 %v407_v7 }
 0x2d6   :  { %656 = shalt.err (!%p653_p12)
}
 0x2d7   :  { %s657_s6 = scalar_lea.hbm %s809_s2, 256 }
 0x2d8   :  { %p658_p13 = scmp.ne.s32.totalorder %s809_s2, %s657_s6  ;;  %p661_p0 = scmp.lt.u32.totalorder %s657_s6, %s809_s2 }
 0x2da   :  { %p663_p1 = pnand %p661_p0, %p658_p13 }
 0x2dc   :  { %666 = shalt.err (!%p663_p1)
}
 0x2dd   :  { %s692_s11 = smov 128   ;;  %s693_s12 = smov 8  }
 0x2de   :  { %430 = dma.vmem_to_hbm [thread:$0]  %s425_s1, 256, %s809_s2, [#allocation4], %s692_s11, %s692_s11, %s693_s12  }
 0x2df   :  { %s667_s18 = scalar_lea.hbm %s810_s3, 16 }
 0x2e0   :  { %p668_p2 = scmp.ne.s32.totalorder %s810_s3, %s667_s18  ;;  %p671_p3 = scmp.lt.u32.totalorder %s667_s18, %s810_s3 }
 0x2e2   :  { %p673_p4 = pnand %p671_p3, %p668_p2 }
 0x362   :  { %v409_v8 = vpop.xlane.xlu0 %408 }
 0x363   :  { %v410_v9 = vrot.slane %v409_v8, 4 }
 0x365   :  { %v411_v10 = vadd.f32 %v410_v9, %v409_v8 }
 0x367   :  { %v412_v11 = vrot.slane %v411_v10, 2 }
 0x369   :  { %v413_v12 = vadd.f32 %v412_v11, %v411_v10 }
 0x36b   :  { %v414_v13 = vrot.slane %v413_v12, 1 }
 0x36d   :  { %v415_v14 = vadd.f32 %v414_v13, %v413_v12 }
 0x36f   :  { %574 = vpush %v415_v14 }
 0x3a0   :  { %s575_s15 = spop %574 }
 0x3a1   :  { %418 = sst [smem:[#allocation7]] %s575_s15 }
 0x3a2   :  { %676 = shalt.err (!%p673_p4)
}
 0x3a3   :  { %s694_s22 = smov [#allocation7]  }
 0x3a4   :  { %438 = dma.smem_to_hbm %s694_s22, 16, %s810_s3, [#allocation5]  }
 0x3a5   :  { %679 = dma.done.wait [#allocation4], 256  }
 0x3a6   :  { %680 = vsyncadd [#allocation4], 4294967040 }
 0x3a7   :  { %681 = dma.done.wait [#allocation5], 16  }
 0x3a8   :  { %682 = vsyncadd [#allocation5], 4294967280 }
 0x3a9   :  { %445 = sfence }
 0x3aa   :  { %446 = vsyncpa [#allocation3], 1 }
 0x3ab   :  { %447 = vsyncpa [#allocation4], 1 }
 0x3ac   :  { %448 = vsyncpa [#allocation5], 1 }

</bundles_post_ra>
